<compile_context>
chip_gen: v6e
topology: v6e:2x2x1
jax: 0.10.0
libtpu: 0.0.40
codegen_flags: <defaults>
</compile_context>

<pallas_src>
import functools

import jax
import jax.numpy as jnp
from jax.experimental import pallas as pl
from jax.experimental.pallas import tpu as pltpu

LANES = 128  # TPU lane width; pad the class dimension up to this for lane-dense stores.


def _ffnn_kernel(x_ref, w1_ref, b1_ref, w2_ref, b2_ref, o_ref, *, num_classes):
    # z1 = x @ W1 + b1   (PyTorch: self.W1(input_vector); NOTE: no activation here,
    #                     matching the reference forward())
    z1 = jnp.dot(x_ref[...], w1_ref[...],
                 preferred_element_type=jnp.float32) + b1_ref[...]
    # z2 = z1 @ W2 + b2  (PyTorch: self.W2(z1)); z1 cast to bf16 for the MXU, f32 acc.
    z2 = jnp.dot(z1.astype(jnp.bfloat16), w2_ref[...],
                 preferred_element_type=jnp.float32) + b2_ref[...]
    # ReLU applied AFTER the second linear (matches reference).
    a = jnp.maximum(z2, 0.0)
    # Mask padded class lanes to a large negative value BEFORE the reduction so the
    # padded zeros do not inflate the log-sum-exp denominator.
    col = jax.lax.broadcasted_iota(jnp.int32, a.shape, dimension=1)
    a = jnp.where(col < num_classes, a, jnp.float32(-1e30))
    # Numerically stable log-softmax over the last dim.
    m = jnp.max(a, axis=-1, keepdims=True)
    shifted = a - m
    lse = jnp.log(jnp.sum(jnp.exp(shifted), axis=-1, keepdims=True))
    o_ref[...] = (shifted - lse).astype(o_ref.dtype)


def _default_tile_m():
    # 4x128^2 MXU on v5e -> 128; 2x256^2 MXU on v6e/v7x -> 256. Conservative fallback 128.
    try:
        kind = jax.devices()[0].device_kind.lower()
    except Exception:
        return 128
    if "v6" in kind or "v7" in kind:
        return 256
    return 128


def ffnn_forward(x, w1, b1, w2, b2, *, tile_m=None):
    """x: (batch, input_dim) f32; w1: (input_dim, h); b1: (1, h); w2: (h, C); b2: (1, C)."""
    x = jnp.asarray(x, jnp.float32)
    batch, input_dim = x.shape
    h = w1.shape[1]
    num_classes = w2.shape[1]
    padded_classes = max(LANES, pl.cdiv(num_classes, LANES) * LANES)

    if tile_m is None:
        tile_m = _default_tile_m()
    b_pad = pl.cdiv(max(batch, 1), tile_m) * tile_m

    # bf16 MXU operands (halves HBM/VMEM traffic for x and weights); biases stay f32.
    x_p = jnp.zeros((b_pad, input_dim), jnp.bfloat16).at[:batch].set(
        x.astype(jnp.bfloat16))
    w1_b = w1.astype(jnp.bfloat16)
    b1_f = b1.reshape(1, h).astype(jnp.float32)
    # Lane-dense padded second layer: zero columns beyond the real classes.
    w2_p = jnp.zeros((h, padded_classes), jnp.bfloat16).at[:, :num_classes].set(
        w2.astype(jnp.bfloat16))
    b2_p = jnp.zeros((1, padded_classes), jnp.float32).at[:, :num_classes].set(
        b2.reshape(1, num_classes).astype(jnp.float32))

    grid = (b_pad // tile_m,)
    kernel = functools.partial(_ffnn_kernel, num_classes=num_classes)

    bytes_accessed = (
        b_pad * input_dim * 2          # x (bf16)
        + input_dim * h * 2            # W1 (bf16)
        + h * 4                        # b1 (f32)
        + h * padded_classes * 2       # W2 padded (bf16)
        + padded_classes * 4           # b2 padded (f32)
        + b_pad * padded_classes * 4   # output (f32)
    )

    out_p = pl.pallas_call(
        kernel,
        out_shape=jax.ShapeDtypeStruct((b_pad, padded_classes), jnp.float32),
        grid_spec=pltpu.PrefetchScalarGridSpec(
            num_scalar_prefetch=0,
            grid=grid,
            in_specs=[
                pl.BlockSpec((tile_m, input_dim), lambda i: (i, 0)),        # x tile
                pl.BlockSpec((input_dim, h), lambda i: (0, 0)),             # W1 resident
                pl.BlockSpec((1, h), lambda i: (0, 0)),                     # b1 resident
                pl.BlockSpec((h, padded_classes), lambda i: (0, 0)),        # W2 resident
                pl.BlockSpec((1, padded_classes), lambda i: (0, 0)),        # b2 resident
            ],
            out_specs=pl.BlockSpec((tile_m, padded_classes), lambda i: (i, 0)),
        ),
        compiler_params=pltpu.CompilerParams(
            dimension_semantics=("parallel",),  # lets v7x split the batch grid over 2 TCs
        ),
        cost_estimate=pl.CostEstimate(
            flops=2 * b_pad * (input_dim * h + h * padded_classes),
            transcendentals=b_pad * padded_classes,  # exp in log-softmax
            bytes_accessed=bytes_accessed,
        ),
    )(x_p, w1_b, b1_f, w2_p, b2_p)

    # Slice away batch padding and padded class lanes.
    return out_p[:batch, :num_classes]


def init_params(key, input_dim, h, output_dim=5):
    # Deterministic init mimicking PyTorch Linear default (uniform +/- 1/sqrt(fan_in)).
    k1, k2, k3, k4 = jax.random.split(key, 4)
    lim1 = 1.0 / jnp.sqrt(input_dim)
    lim2 = 1.0 / jnp.sqrt(h)
    w1 = jax.random.uniform(k1, (input_dim, h), jnp.float32, -lim1, lim1)
    b1 = jax.random.uniform(k2, (1, h), jnp.float32, -lim1, lim1)
    w2 = jax.random.uniform(k3, (h, output_dim), jnp.float32, -lim2, lim2)
    b2 = jax.random.uniform(k4, (1, output_dim), jnp.float32, -lim2, lim2)
    return w1, b1, w2, b2


if __name__ == "__main__":
    key = jax.random.PRNGKey(0)
    batch, input_dim, h = 8, 32, 32
    kx, kp = jax.random.split(key)
    x = jax.random.normal(kx, (batch, input_dim), jnp.float32)
    w1, b1, w2, b2 = init_params(kp, input_dim, h)

    out = ffnn_forward(x, w1, b1, w2, b2)
    jax.block_until_ready(out)

    # Plain f32 JAX reference matching the PyTorch forward exactly.
    z2 = (x @ w1 + b1) @ w2 + b2
    ref = jax.nn.log_softmax(jnp.maximum(z2, 0.0), axis=-1)
    assert out.shape == ref.shape
    # bf16 matmul operands with f32 accumulation -> allow bf16-level tolerance.
    assert jnp.allclose(out, ref, atol=3e-2, rtol=3e-2), float(
        jnp.max(jnp.abs(out - ref)))

    # TODO(synk): compute_Loss / NLLLoss is training-only and not part of forward(); not ported.
    print("KERNEL_OK")
</pallas_src>

<mosaic_0001>
module attributes {stable_mosaic.version = 11 : i64} {
  func.func @_ffnn_kernel(%arg0: i32, %arg1: memref<128x32xbf16, #tpu.memory_space<vmem>>, %arg2: memref<32x32xbf16, #tpu.memory_space<vmem>>, %arg3: memref<1x32xf32, #tpu.memory_space<vmem>>, %arg4: memref<32x128xbf16, #tpu.memory_space<vmem>>, %arg5: memref<1x128xf32, #tpu.memory_space<vmem>>, %arg6: memref<128x128xf32, #tpu.memory_space<vmem>>) attributes {dimension_semantics = [#tpu.dimension_semantics<parallel>], iteration_bounds = array<i64: 1>, scalar_prefetch = 0 : i64, scratch_operands = 0 : i64, tpu.core_type = #tpu.core_type<tc>, window_params = [{transform_indices = @transform_0, window_bounds = array<i64: 128, 32>}, {pipeline_mode = #tpu.pipeline_mode<synchronous>, transform_indices = @transform_1, window_bounds = array<i64: 32, 32>}, {pipeline_mode = #tpu.pipeline_mode<synchronous>, transform_indices = @transform_2, window_bounds = array<i64: 1, 32>}, {pipeline_mode = #tpu.pipeline_mode<synchronous>, transform_indices = @transform_3, window_bounds = array<i64: 32, 128>}, {pipeline_mode = #tpu.pipeline_mode<synchronous>, transform_indices = @transform_4, window_bounds = array<i64: 1, 128>}, {transform_indices = @transform_5, window_bounds = array<i64: 128, 128>}]} {
    %c0 = arith.constant 0 : index
    %c0_0 = arith.constant 0 : index
    %0 = vector.load %arg1[%c0, %c0_0] : memref<128x32xbf16, #tpu.memory_space<vmem>>, vector<128x32xbf16>
    %c0_1 = arith.constant 0 : index
    %c0_2 = arith.constant 0 : index
    %1 = vector.load %arg2[%c0_1, %c0_2] : memref<32x32xbf16, #tpu.memory_space<vmem>>, vector<32x32xbf16>
    %cst = arith.constant dense<0.000000e+00> : vector<128x32xf32>
    %2 = tpu.matmul %0, %1, %cst {dimension_numbers = #tpu.dot_dimension_numbers<[1], [0], [0], [1], [0, 0, 1, 1], [], []>} : vector<128x32xbf16>, vector<32x32xbf16>, vector<128x32xf32> -> vector<128x32xf32>
    %c0_3 = arith.constant 0 : index
    %c0_4 = arith.constant 0 : index
    %3 = vector.load %arg3[%c0_3, %c0_4] : memref<1x32xf32, #tpu.memory_space<vmem>>, vector<1x32xf32>
    %4 = vector.broadcast %3 : vector<1x32xf32> to vector<128x32xf32>
    %5 = arith.addf %2, %4 : vector<128x32xf32>
    %6 = arith.truncf %5 : vector<128x32xf32> to vector<128x32xbf16>
    %c0_5 = arith.constant 0 : index
    %c0_6 = arith.constant 0 : index
    %7 = vector.load %arg4[%c0_5, %c0_6] : memref<32x128xbf16, #tpu.memory_space<vmem>>, vector<32x128xbf16>
    %cst_7 = arith.constant dense<0.000000e+00> : vector<128x128xf32>
    %8 = tpu.matmul %6, %7, %cst_7 {dimension_numbers = #tpu.dot_dimension_numbers<[1], [0], [0], [1], [0, 0, 1, 1], [], []>} : vector<128x32xbf16>, vector<32x128xbf16>, vector<128x128xf32> -> vector<128x128xf32>
    %c0_8 = arith.constant 0 : index
    %c0_9 = arith.constant 0 : index
    %9 = vector.load %arg5[%c0_8, %c0_9] : memref<1x128xf32, #tpu.memory_space<vmem>>, vector<1x128xf32>
    %10 = vector.broadcast %9 : vector<1x128xf32> to vector<128x128xf32>
    %11 = arith.addf %8, %10 : vector<128x128xf32>
    %cst_10 = arith.constant 0.000000e+00 : f32
    %12 = vector.broadcast %cst_10 : f32 to vector<128x128xf32>
    %13 = arith.maximumf %11, %12 : vector<128x128xf32>
    %14 = tpu.iota {dimensions = array<i32: 1>} : vector<128x128xi32>
    %c5_i32 = arith.constant 5 : i32
    %15 = vector.broadcast %c5_i32 : i32 to vector<128x128xi32>
    %16 = arith.cmpi slt, %14, %15 : vector<128x128xi32>
    %cst_11 = arith.constant -1.000000e+30 : f32
    %17 = vector.broadcast %cst_11 : f32 to vector<128x128xf32>
    %18 = arith.select %16, %13, %17 : vector<128x128xi1>, vector<128x128xf32>
    %cst_12 = arith.constant dense<0xFF800000> : vector<128xf32>
    %19 = vector.multi_reduction <maximumf>, %18, %cst_12 [1] : vector<128x128xf32> to vector<128xf32>
    %20 = vector.shape_cast %19 : vector<128xf32> to vector<128x1xf32>
    %21 = vector.broadcast %20 : vector<128x1xf32> to vector<128x128xf32>
    %22 = arith.subf %18, %21 : vector<128x128xf32>
    %23 = math.exp %22 : vector<128x128xf32>
    %cst_13 = arith.constant dense<0.000000e+00> : vector<128xf32>
    %24 = vector.multi_reduction <add>, %23, %cst_13 [1] : vector<128x128xf32> to vector<128xf32>
    %25 = vector.shape_cast %24 : vector<128xf32> to vector<128x1xf32>
    %26 = math.log %25 : vector<128x1xf32>
    %27 = vector.broadcast %26 : vector<128x1xf32> to vector<128x128xf32>
    %28 = arith.subf %22, %27 : vector<128x128xf32>
    %c0_14 = arith.constant 0 : index
    %c0_15 = arith.constant 0 : index
    %29 = vector.load %arg6[%c0_14, %c0_15] : memref<128x128xf32, #tpu.memory_space<vmem>>, vector<128x128xf32>
    tpu.vector_store %arg6[%c0_14, %c0_15], %28 {strides = array<i32>} : memref<128x128xf32, #tpu.memory_space<vmem>>, vector<128x128xf32>,
    return
  }
  func.func @transform_0(%arg0: i32) -> (i32, i32) {
    %c0_i32 = arith.constant 0 : i32
    %c0_i32_0 = arith.constant 0 : i32
    return %arg0, %c0_i32 : i32, i32
  }
  func.func @transform_1(%arg0: i32) -> (i32, i32) {
    %c0_i32 = arith.constant 0 : i32
    %c0_i32_0 = arith.constant 0 : i32
    %c0_i32_1 = arith.constant 0 : i32
    return %c0_i32, %c0_i32_0 : i32, i32
  }
  func.func @transform_2(%arg0: i32) -> (i32, i32) {
    %c0_i32 = arith.constant 0 : i32
    %c0_i32_0 = arith.constant 0 : i32
    %c0_i32_1 = arith.constant 0 : i32
    return %c0_i32, %c0_i32_0 : i32, i32
  }
  func.func @transform_3(%arg0: i32) -> (i32, i32) {
    %c0_i32 = arith.constant 0 : i32
    %c0_i32_0 = arith.constant 0 : i32
    %c0_i32_1 = arith.constant 0 : i32
    return %c0_i32, %c0_i32_0 : i32, i32
  }
  func.func @transform_4(%arg0: i32) -> (i32, i32) {
    %c0_i32 = arith.constant 0 : i32
    %c0_i32_0 = arith.constant 0 : i32
    %c0_i32_1 = arith.constant 0 : i32
    return %c0_i32, %c0_i32_0 : i32, i32
  }
  func.func @transform_5(%arg0: i32) -> (i32, i32) {
    %c0_i32 = arith.constant 0 : i32
    %c0_i32_0 = arith.constant 0 : i32
    return %arg0, %c0_i32 : i32, i32
  }
}

</mosaic_0001>

<bundles_post_ra>
// kernel: tpu_custom_call.1
= control target key start
LH: loop header
LB: loop body
LE: loop exit
PB: predicated region body
PF: predicated region fallthrough
CT: control target
= control target key end

     0   :  { %vm101_vm0 = vcmask 261120   ;;  %s1064_s0 = inlined_call_operand.vmem [shape: bf16[128,32], index: 0, kind: input, shape index: {}]   ;;  %s1065_s1 = inlined_call_operand.vmem [shape: bf16[32,32], index: 1, kind: input, shape index: {}]   ;;  %s1066_s2 = inlined_call_operand.vmem [shape: f32[1,32], index: 2, kind: input, shape index: {}]   ;;  %s1067_s3 = inlined_call_operand.vmem [shape: bf16[32,128], index: 3, kind: input, shape index: {}]   ;;  %s1068_s4 = inlined_call_operand.vmem [shape: f32[1,128], index: 4, kind: input, shape index: {}]   ;;  %s1069_s5 = inlined_call_operand.hbm [shape: f32[128,128], index: 5, kind: output, shape index: {}]  }
   0x1   :  { %v695_v0 = vld [vmem:[%s1065_s1 + $0x8] sm:$0xff]   ;;  %v696_v1 = vld [vmem:[%s1065_s1] sm:$0xff]   ;;  %v699_v4 = vld [vmem:[%s1064_s0 + $0x10] sm:$0xff]  }
   0x2   :  { %652 = vmatprep.subr.bf16.mxu0 %v695_v0  ;;  %v697_v2 = vld [vmem:[%s1064_s0] sm:$0xff]   ;;  %v698_v3 = vld [vmem:[%s1064_s0 + $0x8] sm:$0xff]  }
   0x3   :  { %653 = vmatpush3.bf16.msra.mxu0 %v695_v0  ;;  %656 = vmatprep.mubr.msk.bf16.mxu0 %vm101_vm0, %v697_v2 }
   0x4   :  { %654 = vmatprep.subr.bf16.mxu0 %v696_v1 }
   0x7   :  { %655 = vmatpush3.bf16.msra.mxu0 %v696_v1 }
   0xa   :  { %657 = vmatmul.mubr.msk.bf16.vlgmr.msra.gmra.mxu0 %vm101_vm0, %v698_v3 }
   0xb   :  { %660 = vmatprep.mubr.msk.bf16.mxu0 %vm101_vm0, %v699_v4 }
   0xc   :  { %10 = vsyncpa [#allocation3], 0  ;;  %v700_v5 = vld [vmem:[%s1064_s0 + $0x18] sm:$0xff]   ;;  %v701_v6 = vld [vmem:[%s1064_s0 + $0x20] sm:$0xff]   ;;  %v391_v53 = vlaneseq }
   0xd   :  { %v702_v7 = vld [vmem:[%s1064_s0 + $0x28] sm:$0xff]   ;;  %v703_v8 = vld [vmem:[%s1064_s0 + $0x30] sm:$0xff]   ;;  %v704_v9 = vld [vmem:[%s1064_s0 + $0x38] sm:$0xff]  }
   0xe   :  { %v705_v10 = vld [vmem:[%s1067_s3 + $0x8] sm:$0xff]   ;;  %v706_v11 = vld [vmem:[%s1067_s3] sm:$0xff]   ;;  %v886_v55 = vand.u32 127, %v391_v53  ;;  %s793_s3 = smov [#allocation2]  }
   0xf   :  { %672 = vmatprep.subr.bf16.mxu1 %v705_v10  ;;  %v602_v15 = vld [vmem:[%s1066_s2] ss:$0 sm:$0xff] }
  0x10   :  { %673 = vmatpush3.bf16.msra.mxu1 %v705_v10  ;;  %v884_v54 = vld [vmem:[%s1068_s4] ss:$0 sm:$0xff]  ;;  %vm393_vm1 = vcmp.lt.s32.totalorder %v886_v55, 5  ;;  %s591_s4 = sshll.u32 %s793_s3, 4  ;;  %s592_s4 = int_to_ptr.vmem [resolvable:$true] %s591_s4 }
  0x11   :  { %674 = vmatprep.subr.bf16.mxu1 %v706_v11  ;;  %s771_s18 = scalar_lea.vmem %s592_s4, 2048  ;;  %p776_p1 = scmp.lt.s32.totalorder %s592_s4, %s592_s4 }
  0x12   :  { %661 = vmatmul.mubr.msk.bf16.gmra.mxu0 %vm101_vm0, %v700_v5  ;;  %p772_p0 = scmp.ne.s32.totalorder %s592_s4, %s771_s18  ;;  %p777_p2 = scmp.lt.s32.totalorder %s771_s18, %s771_s18 }
  0x13   :  { %664 = vmatprep.mubr.msk.bf16.mxu0 %vm101_vm0, %v701_v6 }
  0x14   :  { %675 = vmatpush3.bf16.msra.mxu1 %v706_v11  ;;  %p778_p3 = por %p777_p2, %p776_p1 }
  0x16   :  { %p779_p4 = pnand %p778_p3, %p772_p0 }
  0x1a   :  { %665 = vmatmul.mubr.msk.bf16.gmra.mxu0 %vm101_vm0, %v702_v7 }
  0x1b   :  { %668 = vmatprep.mubr.msk.bf16.mxu0 %vm101_vm0, %v703_v8 }
  0x22   :  { %669 = vmatmul.mubr.msk.bf16.gmra.mxu0 %vm101_vm0, %v704_v9 }
  0xca   :  { %v658_v12 = vpop.f32.mrf.mxu0 }
  0xcb   :  { %v169_v20 = vadd.f32 %v658_v12, %v602_v15 }
  0xcc   :  { %v160_v13 = vpop.f32.mrf.mxu0 }
  0xcd   :  { %v161_v18 = vadd.f32 %v602_v15, %v160_v13 }
  0xce   :  { %v659_v14 = vpop.f32.mrf.mxu0 }
  0xcf   :  { %v172_v16 = vadd.f32 %v659_v14, %v602_v15 }
  0xd0   :  { %v163_v17 = vpop.f32.mrf.mxu0 }
  0xd1   :  { %v164_v19 = vadd.f32 %v602_v15, %v163_v17  ;;  %v224_v23 = vpack.c.bf16 %v172_v16, %v169_v20 }
  0xd2   :  { %v662_v21 = vpop.f32.mrf.mxu0 }
  0xd3   :  { %v223_v22 = vpack.c.bf16 %v164_v19, %v161_v18  ;;  %v185_v30 = vadd.f32 %v662_v21, %v602_v15 }
  0xd4   :  { %v176_v24 = vpop.f32.mrf.mxu0 }
  0xd5   :  { %676 = vmatprep.mubr.msk.bf16.mxu1 %vm101_vm0, %v223_v22  ;;  %v177_v28 = vadd.f32 %v602_v15, %v176_v24 }
  0xd6   :  { %v663_v25 = vpop.f32.mrf.mxu0  ;;  %677 = vmatmul.mubr.msk.bf16.vlgmr.msra.gmra.mxu1 %vm101_vm0, %v224_v23 }
  0xd7   :  { %v188_v26 = vadd.f32 %v663_v25, %v602_v15 }
  0xd8   :  { %v179_v27 = vpop.f32.mrf.mxu0 }
  0xd9   :  { %v180_v29 = vadd.f32 %v602_v15, %v179_v27  ;;  %v226_v33 = vpack.c.bf16 %v188_v26, %v185_v30 }
  0xda   :  { %v666_v31 = vpop.f32.mrf.mxu0 }
  0xdb   :  { %v225_v32 = vpack.c.bf16 %v180_v29, %v177_v28  ;;  %v201_v40 = vadd.f32 %v666_v31, %v602_v15 }
  0xdc   :  { %v192_v34 = vpop.f32.mrf.mxu0 }
  0xdd   :  { %680 = vmatprep.mubr.msk.bf16.mxu1 %vm101_vm0, %v225_v32  ;;  %v193_v38 = vadd.f32 %v602_v15, %v192_v34 }
  0xde   :  { %v667_v35 = vpop.f32.mrf.mxu0  ;;  %681 = vmatmul.mubr.msk.bf16.gmra.mxu1 %vm101_vm0, %v226_v33 }
  0xdf   :  { %v204_v36 = vadd.f32 %v667_v35, %v602_v15 }
  0xe0   :  { %v195_v37 = vpop.f32.mrf.mxu0 }
  0xe1   :  { %v196_v39 = vadd.f32 %v602_v15, %v195_v37  ;;  %v228_v43 = vpack.c.bf16 %v204_v36, %v201_v40 }
  0xe2   :  { %v670_v41 = vpop.f32.mrf.mxu0 }
  0xe3   :  { %v227_v42 = vpack.c.bf16 %v196_v39, %v193_v38  ;;  %v217_v50 = vadd.f32 %v670_v41, %v602_v15 }
  0xe4   :  { %v208_v44 = vpop.f32.mrf.mxu0 }
  0xe5   :  { %684 = vmatprep.mubr.msk.bf16.mxu1 %vm101_vm0, %v227_v42  ;;  %v209_v48 = vadd.f32 %v602_v15, %v208_v44 }
  0xe6   :  { %v671_v45 = vpop.f32.mrf.mxu0  ;;  %685 = vmatmul.mubr.msk.bf16.gmra.mxu1 %vm101_vm0, %v228_v43 }
  0xe7   :  { %v220_v46 = vadd.f32 %v671_v45, %v602_v15 }
  0xe8   :  { %v211_v47 = vpop.f32.mrf.mxu0 }
  0xe9   :  { %v212_v49 = vadd.f32 %v602_v15, %v211_v47  ;;  %v230_v52 = vpack.c.bf16 %v220_v46, %v217_v50 }
  0xeb   :  { %v229_v51 = vpack.c.bf16 %v212_v49, %v209_v48 }
  0xed   :  { %688 = vmatprep.mubr.msk.bf16.mxu1 %vm101_vm0, %v229_v51 }
  0xee   :  { %689 = vmatmul.mubr.msk.bf16.gmra.mxu1 %vm101_vm0, %v230_v52 }
 0x196   :  { %v678_v56 = vpop.f32.mrf.mxu1 }
 0x197   :  { %v321_v57 = vadd.f32 %v678_v56, %v884_v54 }
 0x198   :  { %v312_v58 = vpop.f32.mrf.mxu1 }
 0x199   :  { %v377_v59 = vmax.f32 %v321_v57, 0.0  ;;  %v313_v60 = vadd.f32 %v884_v54, %v312_v58 }
 0x19a   :  { %v679_v61 = vpop.f32.mrf.mxu1 }
 0x19b   :  { %v375_v62 = vmax.f32 %v313_v60, 0.0  ;;  %v324_v63 = vadd.f32 %v679_v61, %v884_v54  ;;  %v894_v0 = vsel %vm393_vm1, %v377_v59, -1e+30 }
 0x19c   :  { %414 = vmax.xlane.f32.xlu1 %v894_v0  ;;  %v315_v1 = vpop.f32.mrf.mxu1 }
 0x19d   :  { %v378_v2 = vmax.f32 %v324_v63, 0.0  ;;  %v316_v3 = vadd.f32 %v884_v54, %v315_v1  ;;  %v900_v4 = vsel %vm393_vm1, %v375_v62, -1e+30 }
 0x19e   :  { %v682_v5 = vpop.f32.mrf.mxu1  ;;  %410 = vmax.xlane.f32.xlu0 %v900_v4 }
 0x19f   :  { %v376_v6 = vmax.f32 %v316_v3, 0.0  ;;  %v337_v7 = vadd.f32 %v682_v5, %v884_v54  ;;  %v906_v8 = vsel %vm393_vm1, %v378_v2, -1e+30 }
 0x1a0   :  { %416 = vmax.xlane.f32.xlu1 %v906_v8  ;;  %v328_v9 = vpop.f32.mrf.mxu1 }
 0x1a1   :  { %v381_v10 = vmax.f32 %v337_v7, 0.0  ;;  %v329_v11 = vadd.f32 %v884_v54, %v328_v9  ;;  %v912_v12 = vsel %vm393_vm1, %v376_v6, -1e+30 }
 0x1a2   :  { %v683_v13 = vpop.f32.mrf.mxu1  ;;  %412 = vmax.xlane.f32.xlu0 %v912_v12 }
 0x1a3   :  { %v340_v14 = vadd.f32 %v683_v13, %v884_v54  ;;  %v379_v16 = vmax.f32 %v329_v11, 0.0  ;;  %v919_v19 = vsel %vm393_vm1, %v381_v10, -1e+30 }
 0x1a4   :  { %v331_v15 = vpop.f32.mrf.mxu1 }
 0x1a5   :  { %v382_v17 = vmax.f32 %v340_v14, 0.0  ;;  %v332_v18 = vadd.f32 %v884_v54, %v331_v15  ;;  %v931_v27 = vsel %vm393_vm1, %v379_v16, -1e+30 }
 0x1a6   :  { %v686_v20 = vpop.f32.mrf.mxu1  ;;  %422 = vmax.xlane.f32.xlu0 %v919_v19 }
 0x1a7   :  { %v380_v21 = vmax.f32 %v332_v18, 0.0  ;;  %v353_v22 = vadd.f32 %v686_v20, %v884_v54  ;;  %v925_v23 = vsel %vm393_vm1, %v382_v17, -1e+30 }
 0x1a8   :  { %424 = vmax.xlane.f32.xlu1 %v925_v23  ;;  %v344_v24 = vpop.f32.mrf.mxu1 }
 0x1a9   :  { %v385_v25 = vmax.f32 %v353_v22, 0.0  ;;  %v345_v26 = vadd.f32 %v884_v54, %v344_v24  ;;  %v937_v30 = vsel %vm393_vm1, %v380_v21, -1e+30 }
 0x1aa   :  { %v687_v28 = vpop.f32.mrf.mxu1  ;;  %418 = vmax.xlane.f32.xlu0 %v931_v27 }
 0x1ab   :  { %v356_v29 = vadd.f32 %v687_v28, %v884_v54  ;;  %v383_v32 = vmax.f32 %v345_v26, 0.0  ;;  %v404_v35 = vsel %vm393_vm1, %v385_v25, -1e+30 }
 0x1ac   :  { %v347_v31 = vpop.f32.mrf.mxu1  ;;  %420 = vmax.xlane.f32.xlu1 %v937_v30 }
 0x1ad   :  { %v386_v33 = vmax.f32 %v356_v29, 0.0  ;;  %v348_v34 = vadd.f32 %v884_v54, %v347_v31  ;;  %v952_v42 = vsel %vm393_vm1, %v383_v32, -1e+30 }
 0x1ae   :  { %v690_v36 = vpop.f32.mrf.mxu1  ;;  %430 = vmax.xlane.f32.xlu0 %v404_v35 }
 0x1af   :  { %v384_v37 = vmax.f32 %v348_v34, 0.0  ;;  %v945_v38 = vsel %vm393_vm1, %v386_v33, -1e+30  ;;  %v369_v40 = vadd.f32 %v690_v36, %v884_v54 }
 0x1b0   :  { %v360_v39 = vpop.f32.mrf.mxu1  ;;  %432 = vmax.xlane.f32.xlu1 %v945_v38 }
 0x1b1   :  { %v361_v41 = vadd.f32 %v884_v54, %v360_v39  ;;  %v957_v45 = vsel %vm393_vm1, %v384_v37, -1e+30  ;;  %v389_v47 = vmax.f32 %v369_v40, 0.0 }
 0x1b2   :  { %v691_v43 = vpop.f32.mrf.mxu1  ;;  %426 = vmax.xlane.f32.xlu0 %v952_v42 }
 0x1b3   :  { %v387_v44 = vmax.f32 %v361_v41, 0.0  ;;  %v372_v48 = vadd.f32 %v691_v43, %v884_v54  ;;  %v973_v56 = vsel %vm393_vm1, %v389_v47, -1e+30 }
 0x1b4   :  { %v363_v46 = vpop.f32.mrf.mxu1  ;;  %428 = vmax.xlane.f32.xlu1 %v957_v45 }
 0x1b5   :  { %v364_v49 = vadd.f32 %v884_v54, %v363_v46  ;;  %v964_v50 = vsel %vm393_vm1, %v387_v44, -1e+30  ;;  %v390_v52 = vmax.f32 %v372_v48, 0.0 }
 0x1b6   :  { %434 = vmax.xlane.f32.xlu0 %v964_v50 }
 0x1b7   :  { %v388_v51 = vmax.f32 %v364_v49, 0.0  ;;  %v979_v54 = vsel %vm393_vm1, %v390_v52, -1e+30 }
 0x1b9   :  { %v969_v53 = vsel %vm393_vm1, %v388_v51, -1e+30 }
 0x1ba   :  { %436 = vmax.xlane.f32.xlu1 %v969_v53  ;;  %438 = vmax.xlane.f32.xlu0 %v973_v56 }
 0x1be   :  { %440 = vmax.xlane.f32.xlu1 %v979_v54 }
 0x225   :  { %v415_v57 = vpop.xlane.xlu1 %414 }
 0x226   :  { %v983_v58 = vsub.f32 %v894_v0, %v415_v57 }
 0x227   :  { %v411_v59 = vpop.xlane.xlu0 %410 }
 0x228   :  { %v462_v60 = vmul.f32 1.442695, %v983_v58  ;;  %v987_v61 = vsub.f32 %v900_v4, %v411_v59 }
 0x229   :  { %v417_v62 = vpop.xlane.xlu1 %416 }
 0x22a   :  { %707 = vpow2.f32 %v462_v60  ;;  %v458_v63 = vmul.f32 1.442695, %v987_v61  ;;  %v991_v55 = vsub.f32 %v906_v8, %v417_v62 }
 0x22b   :  { %v413_v1 = vpop.xlane.xlu0 %412 }
 0x22c   :  { %v464_v2 = vmul.f32 1.442695, %v991_v55  ;;  %v995_v3 = vsub.f32 %v912_v12, %v413_v1  ;;  %709 = vpow2.f32 %v458_v63 }
 0x22e   :  { %711 = vpow2.f32 %v464_v2  ;;  %v460_v0 = vmul.f32 1.442695, %v995_v3 }
 0x22f   :  { %v423_v5 = vpop.xlane.xlu0 %422 }
 0x230   :  { %v999_v4 = vsub.f32 %v919_v19, %v423_v5  ;;  %713 = vpow2.f32 %v460_v0 }
 0x231   :  { %v425_v6 = vpop.xlane.xlu1 %424 }
 0x232   :  { %v470_v7 = vmul.f32 1.442695, %v999_v4  ;;  %v1003_v8 = vsub.f32 %v925_v23, %v425_v6 }
 0x233   :  { %v419_v9 = vpop.xlane.xlu0 %418 }
 0x234   :  { %715 = vpow2.f32 %v470_v7  ;;  %v472_v10 = vmul.f32 1.442695, %v1003_v8  ;;  %v1007_v11 = vsub.f32 %v931_v27, %v419_v9 }
 0x235   :  { %v421_v12 = vpop.xlane.xlu1 %420 }
 0x236   :  { %717 = vpow2.f32 %v472_v10  ;;  %v466_v13 = vmul.f32 1.442695, %v1007_v11  ;;  %v1011_v14 = vsub.f32 %v937_v30, %v421_v12 }
 0x237   :  { %v708_v15 = vpop.eup %707  ;;  %v431_v16 = vpop.xlane.xlu0 %430 }
 0x238   :  { %719 = vpow2.f32 %v466_v13  ;;  %v468_v17 = vmul.f32 1.442695, %v1011_v14  ;;  %v1014_v18 = vsub.f32 %v404_v35, %v431_v16  ;;  %494 = vadd.xlane.f32.xlu0 %v708_v15 }
 0x239   :  { %v433_v19 = vpop.xlane.xlu1 %432  ;;  %v710_v20 = vpop.eup %709 }
 0x23a   :  { %721 = vpow2.f32 %v468_v17  ;;  %v478_v21 = vmul.f32 1.442695, %v1014_v18  ;;  %v1018_v22 = vsub.f32 %v945_v38, %v433_v19 }
 0x23b   :  { %v712_v23 = vpop.eup %711  ;;  %v427_v24 = vpop.xlane.xlu0 %426 }
 0x23c   :  { %723 = vpow2.f32 %v478_v21  ;;  %v480_v25 = vmul.f32 1.442695, %v1018_v22  ;;  %v1022_v26 = vsub.f32 %v952_v42, %v427_v24  ;;  %496 = vadd.xlane.f32.xlu1 %v712_v23  ;;  %490 = vadd.xlane.f32.xlu0 %v710_v20 }
 0x23d   :  { %v429_v27 = vpop.xlane.xlu1 %428  ;;  %v714_v30 = vpop.eup %713 }
 0x23e   :  { %725 = vpow2.f32 %v480_v25  ;;  %v474_v28 = vmul.f32 1.442695, %v1022_v26  ;;  %v1026_v29 = vsub.f32 %v957_v45, %v429_v27 }
 0x23f   :  { %v435_v31 = vpop.xlane.xlu0 %434 }
 0x240   :  { %727 = vpow2.f32 %v474_v28  ;;  %v476_v32 = vmul.f32 1.442695, %v1026_v29  ;;  %v1030_v33 = vsub.f32 %v964_v50, %v435_v31  ;;  %492 = vadd.xlane.f32.xlu1 %v714_v30 }
 0x241   :  { %v716_v34 = vpop.eup %715 }
 0x242   :  { %729 = vpow2.f32 %v476_v32  ;;  %v482_v35 = vmul.f32 1.442695, %v1030_v33  ;;  %502 = vadd.xlane.f32.xlu0 %v716_v34 }
 0x243   :  { %v718_v36 = vpop.eup %717  ;;  %v437_v37 = vpop.xlane.xlu1 %436 }
 0x244   :  { %v439_v38 = vpop.xlane.xlu0 %438  ;;  %731 = vpow2.f32 %v482_v35  ;;  %v1034_v39 = vsub.f32 %v969_v53, %v437_v37  ;;  %504 = vadd.xlane.f32.xlu1 %v718_v36 }
 0x245   :  { %v1037_v40 = vsub.f32 %v973_v56, %v439_v38  ;;  %v720_v41 = vpop.eup %719 }
 0x246   :  { %v484_v42 = vmul.f32 1.442695, %v1034_v39  ;;  %498 = vadd.xlane.f32.xlu0 %v720_v41 }
 0x247   :  { %v486_v43 = vmul.f32 1.442695, %v1037_v40  ;;  %v722_v44 = vpop.eup %721  ;;  %v441_v45 = vpop.xlane.xlu1 %440 }
 0x248   :  { %733 = vpow2.f32 %v484_v42  ;;  %v1042_v46 = vsub.f32 %v979_v54, %v441_v45  ;;  %500 = vadd.xlane.f32.xlu1 %v722_v44 }
 0x249   :  { %v724_v47 = vpop.eup %723  ;;  %735 = vpow2.f32 %v486_v43 }
 0x24a   :  { %v488_v48 = vmul.f32 1.442695, %v1042_v46  ;;  %510 = vadd.xlane.f32.xlu0 %v724_v47 }
 0x24b   :  { %v726_v49 = vpop.eup %725 }
 0x24c   :  { %737 = vpow2.f32 %v488_v48  ;;  %512 = vadd.xlane.f32.xlu1 %v726_v49 }
 0x24d   :  { %v728_v50 = vpop.eup %727 }
 0x24e   :  { %506 = vadd.xlane.f32.xlu0 %v728_v50 }
 0x24f   :  { %v730_v51 = vpop.eup %729 }
 0x250   :  { %508 = vadd.xlane.f32.xlu1 %v730_v51 }
 0x251   :  { %v732_v52 = vpop.eup %731 }
 0x252   :  { %514 = vadd.xlane.f32.xlu0 %v732_v52 }
 0x255   :  { %v734_v53 = vpop.eup %733 }
 0x256   :  { %v736_v56 = vpop.eup %735  ;;  %516 = vadd.xlane.f32.xlu1 %v734_v53 }
 0x257   :  { %518 = vadd.xlane.f32.xlu0 %v736_v56 }
 0x259   :  { %v738_v54 = vpop.eup %737 }
 0x25a   :  { %520 = vadd.xlane.f32.xlu1 %v738_v54 }
 0x2c1   :  { %v495_v57 = vpop.xlane.xlu0 %494 }
 0x2c2   :  { %739 = vlog2.f32 %v495_v57 }
 0x2c5   :  { %v497_v59 = vpop.xlane.xlu1 %496  ;;  %v491_v60 = vpop.xlane.xlu0 %490 }
 0x2c6   :  { %741 = vlog2.f32 %v497_v59 }
 0x2c7   :  { %743 = vlog2.f32 %v491_v60 }
 0x2c9   :  { %v493_v62 = vpop.xlane.xlu1 %492 }
 0x2ca   :  { %745 = vlog2.f32 %v493_v62 }
 0x2cb   :  { %v503_v63 = vpop.xlane.xlu0 %502 }
 0x2cc   :  { %747 = vlog2.f32 %v503_v63 }
 0x2cd   :  { %v505_v1 = vpop.xlane.xlu1 %504 }
 0x2ce   :  { %749 = vlog2.f32 %v505_v1 }
 0x2cf   :  { %v740_v2 = vpop.eup %739  ;;  %v499_v0 = vpop.xlane.xlu0 %498 }
 0x2d0   :  { %v527_v5 = vmul.f32 0.6931472, %v740_v2  ;;  %751 = vlog2.f32 %v499_v0 }
 0x2d1   :  { %v501_v6 = vpop.xlane.xlu1 %500 }
 0x2d2   :  { %v556_v7 = vsub.f32 %v983_v58, %v527_v5  ;;  %753 = vlog2.f32 %v501_v6 }
 0x2d3   :  { %v742_v9 = vpop.eup %741  ;;  %v511_v10 = vpop.xlane.xlu0 %510 }
 0x2d4   :  { %v744_v12 = vpop.eup %743  ;;  %572 = vst [vmem:[#allocation2 + $0x10] sm:$0xff] %v556_v7  ;;  %v529_v13 = vmul.f32 0.6931472, %v742_v9  ;;  %755 = vlog2.f32 %v511_v10 }
 0x2d5   :  { %v523_v15 = vmul.f32 0.6931472, %v744_v12  ;;  %v513_v16 = vpop.xlane.xlu1 %512 }
 0x2d6   :  { %v557_v17 = vsub.f32 %v991_v55, %v529_v13  ;;  %757 = vlog2.f32 %v513_v16 }
 0x2d7   :  { %v746_v19 = vpop.eup %745  ;;  %v554_v20 = vsub.f32 %v987_v61, %v523_v15  ;;  %v507_v21 = vpop.xlane.xlu0 %506 }
 0x2d8   :  { %573 = vst [vmem:[#allocation2 + $0x18] sm:$0xff] %v557_v17  ;;  %v525_v23 = vmul.f32 0.6931472, %v746_v19  ;;  %759 = vlog2.f32 %v507_v21 }
 0x2d9   :  { %v748_v58 = vpop.eup %747  ;;  %570 = vst [vmem:[#allocation2] sm:$0xff] %v554_v20  ;;  %v509_v24 = vpop.xlane.xlu1 %508 }
 0x2da   :  { %v555_v25 = vsub.f32 %v995_v3, %v525_v23  ;;  %v535_v27 = vmul.f32 0.6931472, %v748_v58  ;;  %761 = vlog2.f32 %v509_v24 }
 0x2db   :  { %v750_v28 = vpop.eup %749  ;;  %v515_v30 = vpop.xlane.xlu0 %514 }
 0x2dc   :  { %571 = vst [vmem:[#allocation2 + $0x8] sm:$0xff] %v555_v25  ;;  %v560_v55 = vsub.f32 %v999_v4, %v535_v27  ;;  %v537_v31 = vmul.f32 0.6931472, %v750_v28  ;;  %763 = vlog2.f32 %v515_v30 }
 0x2dd   :  { %v752_v32 = vpop.eup %751 }
 0x2de   :  { %576 = vst [vmem:[#allocation2 + $0x30] sm:$0xff] %v560_v55  ;;  %v561_v61 = vsub.f32 %v1003_v8, %v537_v31  ;;  %v531_v34 = vmul.f32 0.6931472, %v752_v32 }
 0x2df   :  { %v754_v35 = vpop.eup %753  ;;  %v517_v36 = vpop.xlane.xlu1 %516 }
 0x2e0   :  { %577 = vst [vmem:[#allocation2 + $0x38] sm:$0xff] %v561_v61  ;;  %v558_v37 = vsub.f32 %v1007_v11, %v531_v34  ;;  %v533_v3 = vmul.f32 0.6931472, %v754_v35  ;;  %765 = vlog2.f32 %v517_v36  ;;  %v519_v38 = vpop.xlane.xlu0 %518 }
 0x2e1   :  { %v756_v41 = vpop.eup %755  ;;  %767 = vlog2.f32 %v519_v38 }
 0x2e2   :  { %574 = vst [vmem:[#allocation2 + $0x20] sm:$0xff] %v558_v37  ;;  %v559_v4 = vsub.f32 %v1011_v14, %v533_v3  ;;  %v543_v42 = vmul.f32 0.6931472, %v756_v41 }
 0x2e3   :  { %v758_v43 = vpop.eup %757  ;;  %v521_v44 = vpop.xlane.xlu1 %520 }
 0x2e4   :  { %575 = vst [vmem:[#allocation2 + $0x28] sm:$0xff] %v559_v4  ;;  %v564_v8 = vsub.f32 %v1014_v18, %v543_v42  ;;  %v545_v45 = vmul.f32 0.6931472, %v758_v43  ;;  %769 = vlog2.f32 %v521_v44 }
 0x2e5   :  { %v760_v47 = vpop.eup %759 }
 0x2e6   :  { %580 = vst [vmem:[#allocation2 + $0x50] sm:$0xff] %v564_v8  ;;  %v565_v11 = vsub.f32 %v1018_v22, %v545_v45  ;;  %v539_v48 = vmul.f32 0.6931472, %v760_v47 }
 0x2e7   :  { %v762_v49 = vpop.eup %761 }
 0x2e8   :  { %581 = vst [vmem:[#allocation2 + $0x58] sm:$0xff] %v565_v11  ;;  %v562_v50 = vsub.f32 %v1022_v26, %v539_v48  ;;  %v541_v51 = vmul.f32 0.6931472, %v762_v49 }
 0x2e9   :  { %v764_v52 = vpop.eup %763 }
 0x2ea   :  { %578 = vst [vmem:[#allocation2 + $0x40] sm:$0xff] %v562_v50  ;;  %v563_v14 = vsub.f32 %v1026_v29, %v541_v51  ;;  %v547_v53 = vmul.f32 0.6931472, %v764_v52 }
 0x2ec   :  { %579 = vst [vmem:[#allocation2 + $0x48] sm:$0xff] %v563_v14  ;;  %v566_v18 = vsub.f32 %v1030_v33, %v547_v53 }
 0x2ed   :  { %v766_v56 = vpop.eup %765 }
 0x2ee   :  { %v768_v54 = vpop.eup %767  ;;  %582 = vst [vmem:[#allocation2 + $0x60] sm:$0xff] %v566_v18  ;;  %v549_v57 = vmul.f32 0.6931472, %v766_v56 }
 0x2ef   :  { %v551_v59 = vmul.f32 0.6931472, %v768_v54 }
 0x2f0   :  { %v567_v22 = vsub.f32 %v1034_v39, %v549_v57 }
 0x2f1   :  { %v770_v60 = vpop.eup %769  ;;  %v568_v62 = vsub.f32 %v1037_v40, %v551_v59 }
 0x2f2   :  { %583 = vst [vmem:[#allocation2 + $0x68] sm:$0xff] %v567_v22  ;;  %v553_v26 = vmul.f32 0.6931472, %v770_v60 }
 0x2f3   :  { %584 = vst [vmem:[#allocation2 + $0x70] sm:$0xff] %v568_v62 }
 0x2f4   :  { %v569_v29 = vsub.f32 %v1042_v46, %v553_v26 }
 0x2f6   :  { %585 = vst [vmem:[#allocation2 + $0x78] sm:$0xff] %v569_v29 }
 0x2f7   :  { %782 = shalt.err (!%p779_p4)
}
 0x2f8   :  { %s794_s19 = smov 128   ;;  %s795_s20 = smov 8  }
 0x2f9   :  { %597 = dma.vmem_to_hbm [thread:$0]  %s592_s4, 2048, %s1069_s5, [#allocation3], %s794_s19, %s794_s19, %s795_s20  }
 0x2fa   :  { %791 = dma.done.wait [#allocation3], 2048  }
 0x2fb   :  { %792 = vsyncadd [#allocation3], 4294965248 }
 0x2fc   :  { %601 = vsyncpa [#allocation3], 1 }

</bundles_post_ra>
